<compile_context>
chip_gen: v7x
topology: tpu7x:2x2x1
jax: 0.10.0
libtpu: 0.0.40
codegen_flags: <defaults>
</compile_context>

<pallas_src>
import numpy as np
import jax
import jax.numpy as jnp
from jax.experimental import pallas as pl
from jax.experimental.pallas import tpu as pltpu

CATEGORICAL_DIM = 16                       # Const.shape[0] for C16 -> 16 points
K = CATEGORICAL_DIM
LATENT_DIM = 2
HIDDEN = 2 * CATEGORICAL_DIM               # 32
COMM_RATE = float(np.log2(CATEGORICAL_DIM) / LATENT_DIM)   # 2.0
EPS = 1e-20


def _lrelu(v):                             # nn.LeakyReLU(0.1)
    return jnp.where(v > 0, v, 0.1 * v)


def _softmax_f(v):                         # softmax over the feature (sublane) axis
    m = jnp.max(v, axis=0, keepdims=True)
    e = jnp.exp(v - m)
    return e / jnp.sum(e, axis=0, keepdims=True)


def vae_gumbel_kernel(x_ref, g_ref, n_ref, wA_ref, wB_ref, vec_ref, out_ref):
    x = x_ref[...]                                                   # (1, TB)

    # ---- fc1 || fc6 fused (in_features == 1 -> rank-1 broadcast, no MXU) ----
    hA = _lrelu(vec_ref[:, 0:1] * x + vec_ref[:, 1:2])               # (64, TB)

    # ---- fc2 || fc7 fused as one block-diagonal MXU pass ----
    resA = (jnp.dot(wA_ref[...], hA, preferred_element_type=jnp.float32)
            + vec_ref[0:K + HIDDEN, 2:3])                            # (48, TB)
    logits = resA[0:K, :]                                            # encode()   (16, TB)
    h5 = _lrelu(resA[K:K + HIDDEN, :])                               # make_const hidden (32, TB)

    # ---- gumbel_softmax(logits, 1, hard=True) -> one-hot over features ----
    # softmax is strictly monotone, so argmax(softmax(z)) == argmax(z):
    # skip the exp/sum/divide entirely and argmax the raw perturbed logits.
    # TODO(synk): the straight-through gradient ((y_hard - y).detach() + y) would
    # need a custom_vjp for training; the forward value is the plain one-hot.
    z = logits + g_ref[...]                                          # (16, TB)
    iota = jax.lax.broadcasted_iota(jnp.int32, z.shape, 0)
    zmax = jnp.max(z, axis=0, keepdims=True)
    amax = jnp.min(jnp.where(z == zmax, iota, K), axis=0, keepdims=True)
    p_h = (iota == amax).astype(jnp.float32)                         # one-hot (16, TB)

    # ---- p = softmax(logits + 1e-20) == softmax(logits)  (shift invariance) ----
    p = _softmax_f(logits)

    # ---- make_const: fc8 with (x, y) output rows de-interleaved on the host ----
    c_all = (jnp.dot(wB_ref[0:HIDDEN, :], h5, preferred_element_type=jnp.float32)
             + vec_ref[0:HIDDEN, 3:4])                               # (32, TB)
    c0 = c_all[0:K, :]
    c1 = c_all[K:2 * K, :]

    # ---- power normalisation via a single rsqrt ----
    # rhopn^2 = sum((rho*sqrt(p+eps))^2) = sum((c0^2+c1^2)*(p+eps)) and
    # rh*cos(phi) = c0/rhopn, rh*sin(phi) = c1/rhopn  (no trig/sqrt/divide).
    inv = jax.lax.rsqrt(
        jnp.sum((c0 * c0 + c1 * c1) * (p + EPS), axis=0, keepdims=True))   # (1, TB)
    out_ref[2 * K:3 * K, :] = p                                      # store early
    cx = c0 * inv
    cy = c1 * inv

    # ---- channel: transmit the selected point, add AWGN scaled by SNR ----
    t0 = jnp.sum(cx * p_h, axis=0, keepdims=True)                    # (1, TB)
    t1 = jnp.sum(cy * p_h, axis=0, keepdims=True)
    out_ref[0:K, :] = p_h                                            # store early
    out_ref[3 * K:4 * K, :] = cx
    out_ref[4 * K:5 * K, :] = cy
    snr = jnp.exp(x * (np.log(10.0) / 10.0))                         # 10 ** (x / 10)
    inv_std = jax.lax.rsqrt(2.0 * COMM_RATE * snr)
    nz = n_ref[...] * inv_std                                        # (2, TB)
    r0 = t0 + nz[0:1, :]
    r1 = t1 + nz[1:2, :]

    # ---- decode: fc3 on (R0, R1, x), fc4, fc5, softmax over features ----
    h2 = _lrelu(vec_ref[0:HIDDEN, 6:7] * r0 + vec_ref[0:HIDDEN, 7:8] * r1
                + vec_ref[0:HIDDEN, 8:9] * x + vec_ref[0:HIDDEN, 9:10])
    h3 = _lrelu(jnp.dot(wB_ref[HIDDEN:2 * HIDDEN, :], h2,
                        preferred_element_type=jnp.float32) + vec_ref[0:HIDDEN, 4:5])
    d = _softmax_f(jnp.dot(wB_ref[2 * HIDDEN:2 * HIDDEN + K, :], h3,
                           preferred_element_type=jnp.float32) + vec_ref[0:K, 5:6])
    out_ref[K:2 * K, :] = d


def init_params(key):
    """torch.nn.Linear-style init: W (out, in), b (out,) ~ U(-1/sqrt(in), 1/sqrt(in))."""
    dims = [  # (in, out) for fc1..fc8
        (1, HIDDEN), (HIDDEN, K), (LATENT_DIM + 1, HIDDEN), (HIDDEN, HIDDEN),
        (HIDDEN, K), (1, HIDDEN), (HIDDEN, K * LATENT_DIM), (HIDDEN, K * LATENT_DIM),
    ]
    keys = jax.random.split(key, 2 * len(dims))
    ws, bs = [], []
    for i, (fi, fo) in enumerate(dims):
        bound = 1.0 / np.sqrt(fi)
        ws.append(jax.random.uniform(keys[2 * i], (fo, fi), jnp.float32, -bound, bound))
        bs.append(jax.random.uniform(keys[2 * i + 1], (fo,), jnp.float32, -bound, bound))
    return ws, bs


def pack_params(ws, bs):
    """Pack the 16 small (out, in) params into three slabs for the kernel."""
    W1, W2, W3, W4, W5, W6, W7, W8 = ws
    b1, b2, b3, b4, b5, b6, b7, b8 = bs
    # fc8 outputs interleave (x, y): out-feature 2k -> C[:, k, 0], 2k+1 -> C[:, k, 1]
    W8d = jnp.concatenate([W8[0::2], W8[1::2]], axis=0)              # (32, 32)
    b8d = jnp.concatenate([b8[0::2], b8[1::2]], axis=0)              # (32,)
    # fc2 || fc7 block-diagonal weight acting on concat(h1, h4)
    wA = jnp.zeros((K + HIDDEN, 2 * HIDDEN), jnp.float32)
    wA = wA.at[0:K, 0:HIDDEN].set(W2)
    wA = wA.at[K:K + HIDDEN, HIDDEN:2 * HIDDEN].set(W7)              # (48, 64)
    # stacked 32-input matmul weights: fc8 (deinterleaved), fc4, fc5
    wB = jnp.concatenate([W8d, W4, W5], axis=0)                      # (80, 32)
    # vector slab: columns are biases / rank-1 weights, rows = output features
    vec = jnp.zeros((2 * HIDDEN, 16), jnp.float32)
    vec = vec.at[:, 0].set(jnp.concatenate([W1[:, 0], W6[:, 0]]))    # fc1 || fc6 weight
    vec = vec.at[:, 1].set(jnp.concatenate([b1, b6]))                # fc1 || fc6 bias
    vec = vec.at[0:K + HIDDEN, 2].set(jnp.concatenate([b2, b7]))     # bias for wA result
    vec = vec.at[0:HIDDEN, 3].set(b8d)                               # fc8 bias
    vec = vec.at[0:HIDDEN, 4].set(b4)                                # fc4 bias
    vec = vec.at[0:K, 5].set(b5)                                     # fc5 bias
    vec = vec.at[0:HIDDEN, 6].set(W3[:, 0])                          # fc3 weight on R0
    vec = vec.at[0:HIDDEN, 7].set(W3[:, 1])                          # fc3 weight on R1
    vec = vec.at[0:HIDDEN, 8].set(W3[:, 2])                          # fc3 weight on x
    vec = vec.at[0:HIDDEN, 9].set(b3)                                # fc3 bias
    return wA, wB, vec


def _pick_tb(B):
    # Prefer >=2 lane-dense (multiple-of-128) grid steps so both v7x TCs get work
    # and input/output DMA pipelines against compute; fall back gracefully.
    for t in (2048, 1024, 512, 256, 128):
        if B % t == 0 and B // t >= 2:
            return t
    for t in (2048, 1024, 512, 256, 128):
        if B % t == 0:
            return t
    return B


def vae_gumbel_forward(x, packed_params, gumbel_noise, gauss_noise, *, tb=None):
    """x: (B,) EbNo dB. gumbel_noise: (B, K). gauss_noise: (B, 2)."""
    B = x.shape[0]
    if tb is None:
        tb = _pick_tb(B)
    assert B % tb == 0
    wA, wB, vec = packed_params

    x2 = x.astype(jnp.float32).reshape(1, B)
    gT = gumbel_noise.astype(jnp.float32).T                          # (K, B)
    nT = gauss_noise.astype(jnp.float32).T                           # (2, B)

    def batch_spec(rows):
        return pl.BlockSpec((rows, tb), lambda i: (0, i))

    def const_spec(a):
        return pl.BlockSpec(a.shape, lambda i: (0, 0))

    slab = pl.pallas_call(
        vae_gumbel_kernel,
        out_shape=jax.ShapeDtypeStruct((5 * K, B), jnp.float32),
        grid_spec=pltpu.PrefetchScalarGridSpec(
            num_scalar_prefetch=0,
            grid=(B // tb,),
            in_specs=[batch_spec(1), batch_spec(K), batch_spec(LATENT_DIM),
                      const_spec(wA), const_spec(wB), const_spec(vec)],
            out_specs=batch_spec(5 * K)),
        compiler_params=pltpu.CompilerParams(
            dimension_semantics=("parallel",)),
    )(x2, gT, nT, wA, wB, vec)

    # Single XLA transpose for all five outputs instead of five separate ones.
    outs = jnp.transpose(slab.reshape(5, K, B), (0, 2, 1))           # (5, B, K)
    p_h, d, p, cx, cy = outs[0], outs[1], outs[2], outs[3], outs[4]
    cn = jnp.stack([cx, cy], axis=-1)                                # (B, K, 2)
    return p_h, d, p, cn


def reference_forward(x, ws, bs, gumbel, gauss):
    """Pure-JAX (batch-major) reference of the PyTorch forward."""
    W1, W2, W3, W4, W5, W6, W7, W8 = ws
    b1, b2, b3, b4, b5, b6, b7, b8 = bs
    hi = jax.lax.Precision.HIGHEST
    lin = lambda a, W, b: jnp.dot(a, W.T, precision=hi) + b
    xb = x.astype(jnp.float32).reshape(-1, 1)
    h1 = _lrelu(lin(xb, W1, b1))
    logits = lin(h1, W2, b2)
    y = jax.nn.softmax(logits + gumbel, axis=-1)
    ind = jnp.argmax(y, axis=-1)
    p_h = jax.nn.one_hot(ind, K, dtype=jnp.float32)
    p = jax.nn.softmax(logits + EPS, axis=-1)
    h4 = _lrelu(lin(xb, W6, b6))
    h5 = _lrelu(lin(h4, W7, b7))
    C = lin(h5, W8, b8).reshape(-1, K, LATENT_DIM)
    c0, c1 = C[:, :, 0], C[:, :, 1]
    inv = jax.lax.rsqrt(jnp.sum((c0 * c0 + c1 * c1) * (p + EPS), axis=-1, keepdims=True))
    cx, cy = c0 * inv, c1 * inv
    cn = jnp.stack([cx, cy], axis=-1)
    t = jnp.stack([jnp.sum(cx * p_h, -1), jnp.sum(cy * p_h, -1)], axis=-1)   # (B, 2)
    snr = 10.0 ** (xb / 10.0)
    r = t + gauss * jax.lax.rsqrt(2.0 * COMM_RATE * snr)
    h2 = _lrelu(lin(jnp.concatenate([r, xb], axis=1), W3, b3))
    h3 = _lrelu(lin(h2, W4, b4))
    d = jax.nn.softmax(lin(h3, W5, b5), axis=-1)
    return p_h, d, p, cn


if __name__ == "__main__":
    key = jax.random.PRNGKey(0)
    k_param, k_x, k_g, k_n = jax.random.split(key, 4)
    B = 256                                                  # -> tb=128, grid=(2,)

    ws, bs = init_params(k_param)
    packed = pack_params(ws, bs)
    x = jax.random.uniform(k_x, (B,), jnp.float32, 0.0, 10.0)        # EbNo in dB

    # RNG torch draws statefully (torch.rand / torch.randn) is generated here
    # deterministically and fed to the kernel as inputs.
    u = jax.random.uniform(k_g, (B, K), jnp.float32)
    gumbel = -jnp.log(-jnp.log(u + EPS) + EPS)                       # sample_gumbel
    gauss = jax.random.normal(k_n, (B, LATENT_DIM), jnp.float32)     # torch.randn

    p_h, d, p, cn = vae_gumbel_forward(x, packed, gumbel, gauss)
    jax.block_until_ready((p_h, d, p, cn))

    assert p_h.shape == (B, K) and p_h.dtype == jnp.float32
    assert d.shape == (B, K) and d.dtype == jnp.float32
    assert p.shape == (B, K) and p.dtype == jnp.float32
    assert cn.shape == (B, K, LATENT_DIM) and cn.dtype == jnp.float32
    assert bool(jnp.all(jnp.sum(p_h, axis=-1) == 1.0))               # exact one-hot rows

    # Pure-JAX reference check.
    p_h_r, d_r, p_r, cn_r = reference_forward(x, ws, bs, gumbel, gauss)
    np.testing.assert_allclose(np.asarray(p), np.asarray(p_r), rtol=2e-3, atol=1e-4)
    np.testing.assert_allclose(np.asarray(cn), np.asarray(cn_r), rtol=2e-3, atol=1e-4)
    ind_k = np.argmax(np.asarray(p_h), axis=-1)
    ind_r = np.argmax(np.asarray(p_h_r), axis=-1)
    match = ind_k == ind_r
    assert match.mean() > 0.98                 # tolerate ultra-rare argmax ties
    np.testing.assert_allclose(np.asarray(d)[match], np.asarray(d_r)[match],
                               rtol=2e-3, atol=1e-4)
    print("KERNEL_OK")
</pallas_src>

<mosaic_0001>
module attributes {stable_mosaic.version = 11 : i64} {
  func.func @vae_gumbel_kernel(%arg0: i32, %arg1: memref<1x128xf32, #tpu.memory_space<vmem>>, %arg2: memref<16x128xf32, #tpu.memory_space<vmem>>, %arg3: memref<2x128xf32, #tpu.memory_space<vmem>>, %arg4: memref<48x64xf32, #tpu.memory_space<vmem>>, %arg5: memref<80x32xf32, #tpu.memory_space<vmem>>, %arg6: memref<64x16xf32, #tpu.memory_space<vmem>>, %arg7: memref<80x128xf32, #tpu.memory_space<vmem>>) attributes {dimension_semantics = [#tpu.dimension_semantics<parallel>], iteration_bounds = array<i64: 2>, scalar_prefetch = 0 : i64, scratch_operands = 0 : i64, tpu.core_type = #tpu.core_type<tc>, window_params = [{transform_indices = @transform_0, window_bounds = array<i64: 1, 128>}, {transform_indices = @transform_1, window_bounds = array<i64: 16, 128>}, {transform_indices = @transform_2, window_bounds = array<i64: 2, 128>}, {pipeline_mode = #tpu.pipeline_mode<synchronous>, transform_indices = @transform_3, window_bounds = array<i64: 48, 64>}, {pipeline_mode = #tpu.pipeline_mode<synchronous>, transform_indices = @transform_4, window_bounds = array<i64: 80, 32>}, {pipeline_mode = #tpu.pipeline_mode<synchronous>, transform_indices = @transform_5, window_bounds = array<i64: 64, 16>}, {transform_indices = @transform_6, window_bounds = array<i64: 80, 128>}]} {
    %c0 = arith.constant 0 : index
    %c0_0 = arith.constant 0 : index
    %0 = vector.load %arg1[%c0, %c0_0] : memref<1x128xf32, #tpu.memory_space<vmem>>, vector<1x128xf32>
    %c0_1 = arith.constant 0 : index
    %c0_2 = arith.constant 0 : index
    %1 = vector.load %arg6[%c0_1, %c0_2] : memref<64x16xf32, #tpu.memory_space<vmem>>, vector<64x1xf32>
    %2 = vector.broadcast %1 : vector<64x1xf32> to vector<64x128xf32>
    %3 = vector.broadcast %0 : vector<1x128xf32> to vector<64x128xf32>
    %4 = arith.mulf %2, %3 : vector<64x128xf32>
    %c0_3 = arith.constant 0 : index
    %c1 = arith.constant 1 : index
    %5 = vector.load %arg6[%c0_3, %c1] : memref<64x16xf32, #tpu.memory_space<vmem>>, vector<64x1xf32>
    %6 = vector.broadcast %5 : vector<64x1xf32> to vector<64x128xf32>
    %7 = arith.addf %4, %6 : vector<64x128xf32>
    %cst = arith.constant 0.000000e+00 : f32
    %8 = vector.broadcast %cst : f32 to vector<64x128xf32>
    %9 = arith.cmpf ogt, %7, %8 : vector<64x128xf32>
    %cst_4 = arith.constant 1.000000e-01 : f32
    %10 = vector.broadcast %cst_4 : f32 to vector<64x128xf32>
    %11 = arith.mulf %10, %7 : vector<64x128xf32>
    %12 = arith.select %9, %7, %11 : vector<64x128xi1>, vector<64x128xf32>
    %c0_5 = arith.constant 0 : index
    %c0_6 = arith.constant 0 : index
    %13 = vector.load %arg4[%c0_5, %c0_6] : memref<48x64xf32, #tpu.memory_space<vmem>>, vector<48x64xf32>
    %cst_7 = arith.constant dense<0.000000e+00> : vector<48x128xf32>
    %14 = tpu.matmul %13, %12, %cst_7 {dimension_numbers = #tpu.dot_dimension_numbers<[1], [0], [0], [1], [0, 0, 1, 1], [], []>} : vector<48x64xf32>, vector<64x128xf32>, vector<48x128xf32> -> vector<48x128xf32>
    %c0_8 = arith.constant 0 : index
    %c2 = arith.constant 2 : index
    %15 = vector.load %arg6[%c0_8, %c2] : memref<64x16xf32, #tpu.memory_space<vmem>>, vector<48x1xf32>
    %16 = vector.broadcast %15 : vector<48x1xf32> to vector<48x128xf32>
    %17 = arith.addf %14, %16 : vector<48x128xf32>
    %18 = vector.extract_strided_slice %17 {offsets = [0, 0], sizes = [16, 128], strides = [1, 1]} : vector<48x128xf32> to vector<16x128xf32>
    %19 = vector.extract_strided_slice %17 {offsets = [16, 0], sizes = [32, 128], strides = [1, 1]} : vector<48x128xf32> to vector<32x128xf32>
    %cst_9 = arith.constant 0.000000e+00 : f32
    %20 = vector.broadcast %cst_9 : f32 to vector<32x128xf32>
    %21 = arith.cmpf ogt, %19, %20 : vector<32x128xf32>
    %cst_10 = arith.constant 1.000000e-01 : f32
    %22 = vector.broadcast %cst_10 : f32 to vector<32x128xf32>
    %23 = arith.mulf %22, %19 : vector<32x128xf32>
    %24 = arith.select %21, %19, %23 : vector<32x128xi1>, vector<32x128xf32>
    %c0_11 = arith.constant 0 : index
    %c0_12 = arith.constant 0 : index
    %25 = vector.load %arg2[%c0_11, %c0_12] : memref<16x128xf32, #tpu.memory_space<vmem>>, vector<16x128xf32>
    %26 = arith.addf %18, %25 : vector<16x128xf32>
    %27 = tpu.iota {dimensions = array<i32: 0>} : vector<16x128xi32>
    %cst_13 = arith.constant dense<0xFF800000> : vector<128xf32>
    %28 = vector.multi_reduction <maximumf>, %26, %cst_13 [0] : vector<16x128xf32> to vector<128xf32>
    %29 = vector.shape_cast %28 : vector<128xf32> to vector<1x128xf32>
    %30 = vector.broadcast %29 : vector<1x128xf32> to vector<16x128xf32>
    %31 = arith.cmpf oeq, %26, %30 : vector<16x128xf32>
    %c16_i32 = arith.constant 16 : i32
    %32 = vector.broadcast %c16_i32 : i32 to vector<16x128xi32>
    %33 = arith.select %31, %27, %32 : vector<16x128xi1>, vector<16x128xi32>
    %cst_14 = arith.constant dense<2147483647> : vector<128xi32>
    %34 = vector.multi_reduction <minsi>, %33, %cst_14 [0] : vector<16x128xi32> to vector<128xi32>
    %35 = vector.shape_cast %34 : vector<128xi32> to vector<1x128xi32>
    %36 = vector.broadcast %35 : vector<1x128xi32> to vector<16x128xi32>
    %37 = arith.cmpi eq, %27, %36 : vector<16x128xi32>
    %38 = arith.extui %37 : vector<16x128xi1> to vector<16x128xi32>
    %39 = arith.sitofp %38 : vector<16x128xi32> to vector<16x128xf32>
    %cst_15 = arith.constant dense<0xFF800000> : vector<128xf32>
    %40 = vector.multi_reduction <maximumf>, %18, %cst_15 [0] : vector<16x128xf32> to vector<128xf32>
    %41 = vector.shape_cast %40 : vector<128xf32> to vector<1x128xf32>
    %42 = vector.broadcast %41 : vector<1x128xf32> to vector<16x128xf32>
    %43 = arith.subf %18, %42 : vector<16x128xf32>
    %44 = math.exp %43 : vector<16x128xf32>
    %cst_16 = arith.constant dense<0.000000e+00> : vector<128xf32>
    %45 = vector.multi_reduction <add>, %44, %cst_16 [0] : vector<16x128xf32> to vector<128xf32>
    %46 = vector.shape_cast %45 : vector<128xf32> to vector<1x128xf32>
    %47 = vector.broadcast %46 : vector<1x128xf32> to vector<16x128xf32>
    %48 = arith.divf %44, %47 : vector<16x128xf32>
    %c0_17 = arith.constant 0 : index
    %c0_18 = arith.constant 0 : index
    %49 = vector.load %arg5[%c0_17, %c0_18] : memref<80x32xf32, #tpu.memory_space<vmem>>, vector<32x32xf32>
    %cst_19 = arith.constant dense<0.000000e+00> : vector<32x128xf32>
    %50 = tpu.matmul %49, %24, %cst_19 {dimension_numbers = #tpu.dot_dimension_numbers<[1], [0], [0], [1], [0, 0, 1, 1], [], []>} : vector<32x32xf32>, vector<32x128xf32>, vector<32x128xf32> -> vector<32x128xf32>
    %c0_20 = arith.constant 0 : index
    %c3 = arith.constant 3 : index
    %51 = vector.load %arg6[%c0_20, %c3] : memref<64x16xf32, #tpu.memory_space<vmem>>, vector<32x1xf32>
    %52 = vector.broadcast %51 : vector<32x1xf32> to vector<32x128xf32>
    %53 = arith.addf %50, %52 : vector<32x128xf32>
    %54 = vector.extract_strided_slice %53 {offsets = [0, 0], sizes = [16, 128], strides = [1, 1]} : vector<32x128xf32> to vector<16x128xf32>
    %55 = vector.extract_strided_slice %53 {offsets = [16, 0], sizes = [16, 128], strides = [1, 1]} : vector<32x128xf32> to vector<16x128xf32>
    %56 = arith.mulf %54, %54 : vector<16x128xf32>
    %57 = arith.mulf %55, %55 : vector<16x128xf32>
    %58 = arith.addf %56, %57 : vector<16x128xf32>
    %cst_21 = arith.constant 9.99999968E-21 : f32
    %59 = vector.broadcast %cst_21 : f32 to vector<16x128xf32>
    %60 = arith.addf %48, %59 : vector<16x128xf32>
    %61 = arith.mulf %58, %60 : vector<16x128xf32>
    %cst_22 = arith.constant dense<0.000000e+00> : vector<128xf32>
    %62 = vector.multi_reduction <add>, %61, %cst_22 [0] : vector<16x128xf32> to vector<128xf32>
    %63 = vector.shape_cast %62 : vector<128xf32> to vector<1x128xf32>
    %64 = math.rsqrt %63 : vector<1x128xf32>
    %c32 = arith.constant 32 : index
    %c0_23 = arith.constant 0 : index
    %65 = vector.load %arg7[%c32, %c0_23] : memref<80x128xf32, #tpu.memory_space<vmem>>, vector<16x128xf32>
    tpu.vector_store %arg7[%c32, %c0_23], %48 {strides = array<i32>} : memref<80x128xf32, #tpu.memory_space<vmem>>, vector<16x128xf32>,
    %66 = vector.broadcast %64 : vector<1x128xf32> to vector<16x128xf32>
    %67 = arith.mulf %54, %66 : vector<16x128xf32>
    %68 = vector.broadcast %64 : vector<1x128xf32> to vector<16x128xf32>
    %69 = arith.mulf %55, %68 : vector<16x128xf32>
    %70 = arith.mulf %67, %39 : vector<16x128xf32>
    %cst_24 = arith.constant dense<0.000000e+00> : vector<128xf32>
    %71 = vector.multi_reduction <add>, %70, %cst_24 [0] : vector<16x128xf32> to vector<128xf32>
    %72 = vector.shape_cast %71 : vector<128xf32> to vector<1x128xf32>
    %73 = arith.mulf %69, %39 : vector<16x128xf32>
    %cst_25 = arith.constant dense<0.000000e+00> : vector<128xf32>
    %74 = vector.multi_reduction <add>, %73, %cst_25 [0] : vector<16x128xf32> to vector<128xf32>
    %75 = vector.shape_cast %74 : vector<128xf32> to vector<1x128xf32>
    %c0_26 = arith.constant 0 : index
    %c0_27 = arith.constant 0 : index
    %76 = vector.load %arg7[%c0_26, %c0_27] : memref<80x128xf32, #tpu.memory_space<vmem>>, vector<16x128xf32>
    tpu.vector_store %arg7[%c0_26, %c0_27], %39 {strides = array<i32>} : memref<80x128xf32, #tpu.memory_space<vmem>>, vector<16x128xf32>,
    %c48 = arith.constant 48 : index
    %c0_28 = arith.constant 0 : index
    %77 = vector.load %arg7[%c48, %c0_28] : memref<80x128xf32, #tpu.memory_space<vmem>>, vector<16x128xf32>
    tpu.vector_store %arg7[%c48, %c0_28], %67 {strides = array<i32>} : memref<80x128xf32, #tpu.memory_space<vmem>>, vector<16x128xf32>,
    %c64 = arith.constant 64 : index
    %c0_29 = arith.constant 0 : index
    %78 = vector.load %arg7[%c64, %c0_29] : memref<80x128xf32, #tpu.memory_space<vmem>>, vector<16x128xf32>
    tpu.vector_store %arg7[%c64, %c0_29], %69 {strides = array<i32>} : memref<80x128xf32, #tpu.memory_space<vmem>>, vector<16x128xf32>,
    %cst_30 = arith.constant 0.23025851 : f32
    %79 = vector.broadcast %cst_30 : f32 to vector<1x128xf32>
    %80 = arith.mulf %0, %79 : vector<1x128xf32>
    %81 = math.exp %80 : vector<1x128xf32>
    %cst_31 = arith.constant 4.000000e+00 : f32
    %82 = vector.broadcast %cst_31 : f32 to vector<1x128xf32>
    %83 = arith.mulf %82, %81 : vector<1x128xf32>
    %84 = math.rsqrt %83 : vector<1x128xf32>
    %c0_32 = arith.constant 0 : index
    %c0_33 = arith.constant 0 : index
    %85 = vector.load %arg3[%c0_32, %c0_33] : memref<2x128xf32, #tpu.memory_space<vmem>>, vector<2x128xf32>
    %86 = vector.broadcast %84 : vector<1x128xf32> to vector<2x128xf32>
    %87 = arith.mulf %85, %86 : vector<2x128xf32>
    %88 = vector.extract_strided_slice %87 {offsets = [0, 0], sizes = [1, 128], strides = [1, 1]} : vector<2x128xf32> to vector<1x128xf32>
    %89 = arith.addf %72, %88 : vector<1x128xf32>
    %90 = vector.extract_strided_slice %87 {offsets = [1, 0], sizes = [1, 128], strides = [1, 1]} : vector<2x128xf32> to vector<1x128xf32>
    %91 = arith.addf %75, %90 : vector<1x128xf32>
    %c0_34 = arith.constant 0 : index
    %c6 = arith.constant 6 : index
    %92 = vector.load %arg6[%c0_34, %c6] : memref<64x16xf32, #tpu.memory_space<vmem>>, vector<32x1xf32>
    %93 = vector.broadcast %92 : vector<32x1xf32> to vector<32x128xf32>
    %94 = vector.broadcast %89 : vector<1x128xf32> to vector<32x128xf32>
    %95 = arith.mulf %93, %94 : vector<32x128xf32>
    %c0_35 = arith.constant 0 : index
    %c7 = arith.constant 7 : index
    %96 = vector.load %arg6[%c0_35, %c7] : memref<64x16xf32, #tpu.memory_space<vmem>>, vector<32x1xf32>
    %97 = vector.broadcast %96 : vector<32x1xf32> to vector<32x128xf32>
    %98 = vector.broadcast %91 : vector<1x128xf32> to vector<32x128xf32>
    %99 = arith.mulf %97, %98 : vector<32x128xf32>
    %100 = arith.addf %95, %99 : vector<32x128xf32>
    %c0_36 = arith.constant 0 : index
    %c8 = arith.constant 8 : index
    %101 = vector.load %arg6[%c0_36, %c8] : memref<64x16xf32, #tpu.memory_space<vmem>>, vector<32x1xf32>
    %102 = vector.broadcast %101 : vector<32x1xf32> to vector<32x128xf32>
    %103 = vector.broadcast %0 : vector<1x128xf32> to vector<32x128xf32>
    %104 = arith.mulf %102, %103 : vector<32x128xf32>
    %105 = arith.addf %100, %104 : vector<32x128xf32>
    %c0_37 = arith.constant 0 : index
    %c9 = arith.constant 9 : index
    %106 = vector.load %arg6[%c0_37, %c9] : memref<64x16xf32, #tpu.memory_space<vmem>>, vector<32x1xf32>
    %107 = vector.broadcast %106 : vector<32x1xf32> to vector<32x128xf32>
    %108 = arith.addf %105, %107 : vector<32x128xf32>
    %cst_38 = arith.constant 0.000000e+00 : f32
    %109 = vector.broadcast %cst_38 : f32 to vector<32x128xf32>
    %110 = arith.cmpf ogt, %108, %109 : vector<32x128xf32>
    %cst_39 = arith.constant 1.000000e-01 : f32
    %111 = vector.broadcast %cst_39 : f32 to vector<32x128xf32>
    %112 = arith.mulf %111, %108 : vector<32x128xf32>
    %113 = arith.select %110, %108, %112 : vector<32x128xi1>, vector<32x128xf32>
    %c32_40 = arith.constant 32 : index
    %c0_41 = arith.constant 0 : index
    %114 = vector.load %arg5[%c32_40, %c0_41] : memref<80x32xf32, #tpu.memory_space<vmem>>, vector<32x32xf32>
    %cst_42 = arith.constant dense<0.000000e+00> : vector<32x128xf32>
    %115 = tpu.matmul %114, %113, %cst_42 {dimension_numbers = #tpu.dot_dimension_numbers<[1], [0], [0], [1], [0, 0, 1, 1], [], []>} : vector<32x32xf32>, vector<32x128xf32>, vector<32x128xf32> -> vector<32x128xf32>
    %c0_43 = arith.constant 0 : index
    %c4 = arith.constant 4 : index
    %116 = vector.load %arg6[%c0_43, %c4] : memref<64x16xf32, #tpu.memory_space<vmem>>, vector<32x1xf32>
    %117 = vector.broadcast %116 : vector<32x1xf32> to vector<32x128xf32>
    %118 = arith.addf %115, %117 : vector<32x128xf32>
    %cst_44 = arith.constant 0.000000e+00 : f32
    %119 = vector.broadcast %cst_44 : f32 to vector<32x128xf32>
    %120 = arith.cmpf ogt, %118, %119 : vector<32x128xf32>
    %cst_45 = arith.constant 1.000000e-01 : f32
    %121 = vector.broadcast %cst_45 : f32 to vector<32x128xf32>
    %122 = arith.mulf %121, %118 : vector<32x128xf32>
    %123 = arith.select %120, %118, %122 : vector<32x128xi1>, vector<32x128xf32>
    %c64_46 = arith.constant 64 : index
    %c0_47 = arith.constant 0 : index
    %124 = vector.load %arg5[%c64_46, %c0_47] : memref<80x32xf32, #tpu.memory_space<vmem>>, vector<16x32xf32>
    %cst_48 = arith.constant dense<0.000000e+00> : vector<16x128xf32>
    %125 = tpu.matmul %124, %123, %cst_48 {dimension_numbers = #tpu.dot_dimension_numbers<[1], [0], [0], [1], [0, 0, 1, 1], [], []>} : vector<16x32xf32>, vector<32x128xf32>, vector<16x128xf32> -> vector<16x128xf32>
    %c0_49 = arith.constant 0 : index
    %c5 = arith.constant 5 : index
    %126 = vector.load %arg6[%c0_49, %c5] : memref<64x16xf32, #tpu.memory_space<vmem>>, vector<16x1xf32>
    %127 = vector.broadcast %126 : vector<16x1xf32> to vector<16x128xf32>
    %128 = arith.addf %125, %127 : vector<16x128xf32>
    %cst_50 = arith.constant dense<0xFF800000> : vector<128xf32>
    %129 = vector.multi_reduction <maximumf>, %128, %cst_50 [0] : vector<16x128xf32> to vector<128xf32>
    %130 = vector.shape_cast %129 : vector<128xf32> to vector<1x128xf32>
    %131 = vector.broadcast %130 : vector<1x128xf32> to vector<16x128xf32>
    %132 = arith.subf %128, %131 : vector<16x128xf32>
    %133 = math.exp %132 : vector<16x128xf32>
    %cst_51 = arith.constant dense<0.000000e+00> : vector<128xf32>
    %134 = vector.multi_reduction <add>, %133, %cst_51 [0] : vector<16x128xf32> to vector<128xf32>
    %135 = vector.shape_cast %134 : vector<128xf32> to vector<1x128xf32>
    %136 = vector.broadcast %135 : vector<1x128xf32> to vector<16x128xf32>
    %137 = arith.divf %133, %136 : vector<16x128xf32>
    %c16 = arith.constant 16 : index
    %c0_52 = arith.constant 0 : index
    %138 = vector.load %arg7[%c16, %c0_52] : memref<80x128xf32, #tpu.memory_space<vmem>>, vector<16x128xf32>
    tpu.vector_store %arg7[%c16, %c0_52], %137 {strides = array<i32>} : memref<80x128xf32, #tpu.memory_space<vmem>>, vector<16x128xf32>,
    return
  }
  func.func @transform_0(%arg0: i32) -> (i32, i32) {
    %c0_i32 = arith.constant 0 : i32
    %c0_i32_0 = arith.constant 0 : i32
    return %c0_i32, %arg0 : i32, i32
  }
  func.func @transform_1(%arg0: i32) -> (i32, i32) {
    %c0_i32 = arith.constant 0 : i32
    %c0_i32_0 = arith.constant 0 : i32
    return %c0_i32, %arg0 : i32, i32
  }
  func.func @transform_2(%arg0: i32) -> (i32, i32) {
    %c0_i32 = arith.constant 0 : i32
    %c0_i32_0 = arith.constant 0 : i32
    return %c0_i32, %arg0 : i32, i32
  }
  func.func @transform_3(%arg0: i32) -> (i32, i32) {
    %c0_i32 = arith.constant 0 : i32
    %c0_i32_0 = arith.constant 0 : i32
    %c0_i32_1 = arith.constant 0 : i32
    return %c0_i32, %c0_i32_0 : i32, i32
  }
  func.func @transform_4(%arg0: i32) -> (i32, i32) {
    %c0_i32 = arith.constant 0 : i32
    %c0_i32_0 = arith.constant 0 : i32
    %c0_i32_1 = arith.constant 0 : i32
    return %c0_i32, %c0_i32_0 : i32, i32
  }
  func.func @transform_5(%arg0: i32) -> (i32, i32) {
    %c0_i32 = arith.constant 0 : i32
    %c0_i32_0 = arith.constant 0 : i32
    %c0_i32_1 = arith.constant 0 : i32
    return %c0_i32, %c0_i32_0 : i32, i32
  }
  func.func @transform_6(%arg0: i32) -> (i32, i32) {
    %c0_i32 = arith.constant 0 : i32
    %c0_i32_0 = arith.constant 0 : i32
    return %c0_i32, %arg0 : i32, i32
  }
}

</mosaic_0001>

<bundles_post_ra>
// kernel: tpu_custom_call.1
= control target key start
LH: loop header
LB: loop body
LE: loop exit
PB: predicated region body
PF: predicated region fallthrough
CT: control target
= control target key end

     0   :  { %11 = vsyncpa [#allocation4], 0  ;;  %s2031_s0 = inlined_call_operand.vmem [shape: f32[1,256], index: 0, kind: input, shape index: {}]   ;;  %s2032_s1 = inlined_call_operand.vmem [shape: f32[16,256], index: 1, kind: input, shape index: {}]   ;;  %s2033_s2 = inlined_call_operand.vmem [shape: f32[2,256], index: 2, kind: input, shape index: {}]   ;;  %s2034_s3 = inlined_call_operand.vmem [shape: f32[48,64], index: 3, kind: input, shape index: {}]   ;;  %s2035_s4 = inlined_call_operand.vmem [shape: f32[80,32], index: 4, kind: input, shape index: {}]   ;;  %s2036_s5 = inlined_call_operand.vmem [shape: f32[64,16], index: 5, kind: input, shape index: {}]   ;;  %s2037_s6 = inlined_call_operand.hbm [shape: f32[80,256], index: 6, kind: output, shape index: {}]  }
   0x1   :  { %13 = vsyncpa [#allocation4 + $0x1], 0  ;;  %s1711_s21 = smov 0   ;;  %s1713_s22 = smov 0  }
   0x2   :  { %s1715_s23 = smov 0   ;;  %s1717_s24 = smov 0  }
   0x3 LB: > { %s1732_s25 = sadd.s32 4294967295, %s1659_s24   ;;  %s1328_s26 = sadd.s32 4294967294, %s1659_s24   ;;  %s1659_s24 = sphi %s1717_s24, %s2043_s24   ;;  %s1655_s23 = sphi %s1715_s23, %s2042_s23   ;;  %s1651_s22 = sphi %s1713_s22, %s2041_s22   ;;  %s1647_s21 = sphi %s1711_s21, %s2040_s21  }
   0x4   : > { %s1736_s27 = sadd.s32 1, %s1659_s24   ;;  %s52_s28 = sadd.s32 1, %s1655_s23 }
   0x5   : > { %s49_s29 = ssub.s32 %s1659_s24, %s1736_s27  ;;  %p59_p0 = scmp.ne.s32.totalorder %s1655_s23, %s1651_s22 }
   0x6   : > { %p50_p1 = scmp.eq.s32.totalorder %s49_s29, 0  ;;  %p60_p2 = scmp.eq.s32.totalorder %s1659_s24, 0 }
   0x7   : > { %p178_p3 = scmp.eq.s32.totalorder %s1732_s25, 1  ;;  %p183_p4 = scmp.ne.s32.totalorder %s1651_s22, %s1647_s21 }
   0x8   : > { %s1748_s30 = scalar_select %p50_p1, %s1655_s23, %s52_s28  }
   0x9   : > { %p61_p5 = por %p60_p2, %p59_p0  ;;  %p1750_p6 = por %p178_p3, %p59_p0 }
   0xa   : > { %p184_p7 = scmp.eq.s32.totalorder %s1328_s26, 1  ;;  %p1330_p9 = scmp.ge.s32.totalorder %s1659_s24, 2 }
   0xc   : > { %p1754_p8 = por %p184_p7, %p183_p4  ;;  %209 = sbr.rel (%p1330_p9) target bundleno = 26 (0x1a), region = 28 }
  0x13   : > { %218 = sbr.rel (!%p61_p5) target bundleno = 26 (0x1a), region = 36  ;;  %s220_s9 = sand.u32 (%p61_p5), 1, %s1655_s23  }
  0x14   : > { %s1332_s10 = sshll.u32 (%p61_p5), %s1659_s24, 3  ;;  %s1331_s11 = sshll.u32 (%p61_p5), %s220_s9, 4 }
  0x15   : > { %s224_s14 = scalar_lea.vmem (%p61_p5), %s2032_s1, %s1332_s10  ;;  %s222_s15 = scalar_lea.vmem (%p61_p5), [#allocation2], %s1331_s11 }
  0x16   : > { %v254_v0 = vld [vmem:[%s224_s14] sm:$0xff] (%p61_p5)  ;;  %v256_v1 = vld [vmem:[%s224_s14 + $0x10] sm:$0xff] (%p61_p5) }
  0x17   : > { %255 = vst [vmem:[%s222_s15] sm:$0xff] (%p61_p5), %v254_v0  ;;  %257 = vst [vmem:[%s222_s15 + $0x8] sm:$0xff] (%p61_p5), %v256_v1 }
  0x1a PF: > { %p1333_p10 = scmp.ge.s32.totalorder %s1659_s24, 1  ;;  %p269_p11 = scmp.lt.s32.totalorder %s1659_s24, 3 }
  0x1c   : > { %p270_p12 = pnand %p1333_p10, %p269_p11 }
  0x1d   : > { %v1771_v2 = vld [vmem:[%s2036_s5 + $0x10] sm:$0xff] (!%p270_p12)  ;;  %v1776_v3 = vld [vmem:[%s2036_s5] sm:$0xff] (!%p270_p12)  ;;  %v1661_v4 = vmov (!%p270_p12), 1   ;;  %v1783_v5 = vld [vmem:[%s2036_s5 + $0x8] sm:$0xff] (!%p270_p12)  ;;  %v1662_v6 = vmov (!%p270_p12), 0   ;;  %vm488_vm0 = vcmask (!%p270_p12), 523264   ;;  %v369_v14 = vlaneseq (!%p270_p12) }
  0x1e   : > { %273 = sbr.rel (%p270_p12) target bundleno = 1251 (0x4e3), region = 78  ;;  %1553 = vset.pattern.permute.xlu0 (!%p270_p12), %v1661_v4  ;;  %1551 = vset.pattern.permute.xlu1 (!%p270_p12), %v1661_v4  ;;  %v1790_v7 = vld [vmem:[%s2036_s5 + $0x18] sm:$0xff] (!%p270_p12)  ;;  %v325_v8 = vld [vmem:[%s2036_s5 + $0x28] sm:$0xff] (!%p270_p12)  ;;  %v324_v9 = vld [vmem:[%s2036_s5 + $0x20] sm:$0xff] (!%p270_p12)  ;;  %v1663_v13 = vmov (!%p270_p12), 2   ;;  %p312_p13 = scmp.lt.s32.totalorder (!%p270_p12), %s1732_s25, 1 }
  0x1f   : > { %391 = vperm.xlu0 (!%p270_p12), %1553, %v1771_v2   ;;  %383 = vperm.xlu1 (!%p270_p12), %1551, %v1776_v3   ;;  %v326_v10 = vld [vmem:[%s2036_s5 + $0x30] sm:$0xff] (!%p270_p12)  ;;  %v327_v11 = vld [vmem:[%s2036_s5 + $0x38] sm:$0xff] (!%p270_p12)  ;;  %v446_v12 = vld [vmem:[%s2034_s3] sm:$0xff] (!%p270_p12)  ;;  %v1820_v15 = vshrl.u32 (!%p270_p12), %v369_v14, 7  ;;  %vm700_vm9 = vcmask (!%p270_p12), 261120   ;;  %s1888_s26 = sand.u32 (!%p270_p12), 1, %s1651_s22  }
  0x20   : > { %1409 = vmatprep.mubr.msk.f32.mxu0 (!%p270_p12), %vm488_vm0, %v446_v12  ;;  %v448_v12 = vld [vmem:[%s2034_s3 + $0x10] sm:$0xff] (!%p270_p12)  ;;  %v450_v14 = vld [vmem:[%s2034_s3 + $0x20] sm:$0xff] (!%p270_p12)  ;;  %s1497_s15 = smul.u32 (!%p270_p12), 80, %s1888_s26  ;;  %s1227_s11 = scalar_lea.sflag (!%p270_p12), [#allocation4], %s1888_s26 }
  0x21   : > { %v1827_v16 = vsub.s32 (!%p270_p12), 0, %v1820_v15 }
  0x22   : > { %s1911_s16 = scalar_lea.vmem (!%p270_p12), [#allocation3], %s1497_s15 }
  0x23   : > { %1554 = vset.pattern.permute.xlu0 (!%p270_p12), %v1662_v6  ;;  %387 = vperm.xlu1 (!%p270_p12), %1551, %v1783_v5  }
  0x24   : > { %330 = vperm.xlu0 (!%p270_p12), %1554, %v1776_v3  }
  0x25   : > { %s1818_s19 = scalar_select %p312_p13, %s1732_s25, 1 }
  0x27   : > { %1552 = vset.pattern.permute.xlu1 %v1662_v6  ;;  %s314_s28 = scalar_lea.vmem %s2031_s0, %s1818_s19  ;;  %s1335_s20 = sshll.u32 %s1818_s19, 1 }
  0x28   : > { %335 = vperm.xlu0 %1554, %v1783_v5   ;;  %345 = vperm.xlu1 %1552, %v1790_v7   ;;  %v1829_v17 = vld [vmem:[%s314_s28] sm:$0x1]  ;;  %s1334_s28 = sshll.u32 %s1888_s26, 4  ;;  %s318_s9 = scalar_lea.vmem %s2033_s2, %s1335_s20 }
  0x29   : > { %v1833_v20 = vrot.slane %v1829_v17, %v1827_v16  ;;  %s278_s29 = scalar_lea.vmem [#allocation2], %s1334_s28  ;;  %s1239_s28 = sshll.u32 %s1911_s16, 4  ;;  %s1980_s28 = int_to_ptr.vmem [resolvable:$true] %s1239_s28 }
  0x2a   : > { %s1597_s12 = scalar_lea.vmem %s1980_s28, 1280 }
  0x2b   : > { %p1598_p0 = scmp.ne.s32.totalorder %s1980_s28, %s1597_s12 }
  0x2c   : > { %340 = vperm.xlu0 %1554, %v1771_v2   ;;  %1555 = vset.pattern.permute.xlu1 %v1661_v4 }
  0x2d   : > { %395 = vperm.xlu1 %1555, %v1790_v7   ;;  %p1599_p1 = pnand %p1598_p0, %p1750_p6 }
  0x2f   : > { %p1600_p2 = pneg %p1599_p1 }
  0x30   : > { %355 = vperm.xlu0 %1554, %v325_v8  }
  0x31   : > { %1556 = vset.pattern.permute.xlu1 %v1662_v6 }
  0x32   : > { %350 = vperm.xlu1 %1556, %v324_v9  }
  0x34   : > { %360 = vperm.xlu0 %1554, %v326_v10  }
  0x36   : > { %1557 = vset.pattern.permute.xlu1 %v1661_v4 }
  0x37   : > { %399 = vperm.xlu1 %1557, %v324_v9  }
  0x38   : > { %1559 = vset.pattern.permute.xlu0 %v1661_v4 }
  0x39   : > { %407 = vperm.xlu0 %1559, %v326_v10  }
  0x3b   : > { %403 = vperm.xlu1 %1557, %v325_v8  }
  0x3d   : > { %1562 = vset.pattern.permute.xlu0 %v1663_v13 }
  0x3e   : > { %475 = vperm.xlu0 %1562, %v1790_v7  }
  0x3f   : > { %1558 = vset.pattern.permute.xlu1 %v1662_v6 }
  0x40   : > { %365 = vperm.xlu1 %1558, %v327_v11  }
  0x42   : > { %460 = vperm.xlu0 %1562, %v1776_v3  }
  0x44   : > { %1560 = vset.pattern.permute.xlu1 %v1661_v4 }
  0x45   : > { %411 = vperm.xlu1 %1560, %v327_v11   ;;  %v447_v11 = vld [vmem:[%s2034_s3 + $0x8] sm:$0xff] }
  0x49   : > { %1561 = vset.pattern.permute.xlu1 %v1663_v13  ;;  %v449_v13 = vld [vmem:[%s2034_s3 + $0x18] sm:$0xff] }
  0x4a   : > { %470 = vperm.xlu1 %1561, %v1771_v2  }
  0x4e   : > { %480 = vperm.xlu1 %1561, %v324_v9  }
  0x52   : > { %485 = vperm.xlu1 %1561, %v325_v8  }
  0x56   : > { %465 = vperm.xlu1 %1561, %v1783_v5  }
  0x9e   : > { %v384_v18 = vpop.permute.xlu1 %383  ;;  %v392_v19 = vpop.permute.xlu0 %391 }
  0xa2   : > { %v388_v21 = vpop.permute.xlu1 %387 }
  0xa3   : > { %v331_v22 = vpop.permute.xlu0 %330 }
  0xa4   : > { %v374_v23 = vmul.f32 %v1833_v20, %v331_v22  ;;  %v1665_v22 = vmov 6  }
  0xa6   : > { %v414_v24 = vadd.f32 %v384_v18, %v374_v23  ;;  %v451_v18 = vld [vmem:[%s2034_s3 + $0x28] sm:$0xff]  ;;  %v1666_v23 = vmov 7  }
  0xa7   : > { %v336_v25 = vpop.permute.xlu0 %335  ;;  %v346_v26 = vpop.permute.xlu1 %345 }
  0xa8   : > { %v375_v27 = vmul.f32 %v1833_v20, %v336_v25  ;;  %v430_v29 = vmul.f32 0.1, %v414_v24  ;;  %v377_v30 = vmul.f32 %v1833_v20, %v346_v26  ;;  %vm422_vm1 = vcmp.gt.f32.partialorder %v414_v24, 0.0 }
  0xa9   : > { %v1668_v25 = vmov 9  }
  0xaa   : > { %v415_v28 = vadd.f32 %v388_v21, %v375_v27  ;;  %v438_v37 = vsel %vm422_vm1, %v414_v24, %v430_v29  ;;  %v1664_v21 = vmov 3   ;;  %v1667_v24 = vmov 8  }
  0xab   : > { %v341_v31 = vpop.permute.xlu0 %340  ;;  %1563 = vset.pattern.permute.xlu0 %v1664_v21  ;;  %1564 = vset.pattern.permute.xlu1 %v1664_v21 }
  0xac   : > { %v376_v32 = vmul.f32 %v1833_v20, %v341_v31  ;;  %v396_v33 = vpop.permute.xlu1 %395  ;;  %vm423_vm2 = vcmp.gt.f32.partialorder %v415_v28, 0.0  ;;  %v431_v34 = vmul.f32 0.1, %v415_v28  ;;  %682 = vperm.xlu0 %1563, %v1776_v3   ;;  %687 = vperm.xlu1 %1564, %v1783_v5  }
  0xad   : > { %v417_v35 = vadd.f32 %v396_v33, %v377_v30  ;;  %v615_v33 = vld [vmem:[%s278_s29 + $0x8] sm:$0xff] }
  0xae   : > { %v416_v36 = vadd.f32 %v392_v19, %v376_v32  ;;  %v439_v38 = vsel %vm423_vm2, %v415_v28, %v431_v34  ;;  %v672_v19 = vld [vmem:[%s2035_s4] sm:$0xff] }
  0xaf   : > { %vm425_vm3 = vcmp.gt.f32.partialorder %v417_v35, 0.0  ;;  %v433_v39 = vmul.f32 0.1, %v417_v35  ;;  %v1457_v40 = vpack.c.bf16 %v439_v38, %v438_v37  ;;  %v356_v44 = vpop.permute.xlu0 %355  ;;  %1426 = vmatprep.mubr.msk.f32.mxu1 %vm700_vm9, %v672_v19  ;;  %v674_v19 = vld [vmem:[%s2035_s4 + $0x10] sm:$0xff] }
  0xb0   : > { %vm424_vm4 = vcmp.gt.f32.partialorder %v416_v36, 0.0  ;;  %v432_v41 = vmul.f32 0.1, %v416_v36  ;;  %v379_v51 = vmul.f32 %v1833_v20, %v356_v44  ;;  %697 = vperm.xlu0 %1563, %v1790_v7   ;;  %692 = vperm.xlu1 %1564, %v1771_v2  }
  0xb1   : > { %v351_v42 = vpop.permute.xlu1 %350  ;;  %1458 = vmatprep.subr.bf16.mxu0 %v1457_v40  ;;  %v441_v43 = vsel %vm425_vm3, %v417_v35, %v433_v39 }
  0xb2   : > { %1460 = vmatpush3.bf16.msra.mxu0 %v1457_v40  ;;  %v440_v45 = vsel %vm424_vm4, %v416_v36, %v432_v41  ;;  %v378_v47 = vmul.f32 %v1833_v20, %v351_v42  ;;  %v614_v36 = vld [vmem:[%s278_s29] sm:$0xff]  ;;  %s1354_s29 = sshll.u32 %s1732_s25, 7  ;;  %s1672_s25 = smov [#allocation3]  }
  0xb3   : > { %v1461_v46 = vpack.c.bf16 %v441_v43, %v440_v45  ;;  %v361_v50 = vpop.permute.xlu0 %360  ;;  %s1985_s10 = scalar_lea.hbm %s2037_s6, %s1354_s29  ;;  %s1601_s13 = sshll.u32 %s1672_s25, 4  ;;  %s1602_s13 = int_to_ptr.vmem [resolvable:$false] %s1601_s13 }
  0xb4   : > { %v380_v57 = vmul.f32 %v1833_v20, %v361_v50  ;;  %1565 = vset.pattern.permute.xlu1 %v1665_v22  ;;  %1566 = vset.pattern.permute.xlu0 %v1665_v22  ;;  %s1603_s14 = scalar_lea.vmem %s1602_s13, 2560  ;;  %p1604_p3 = scmp.lt.s32.totalorder %s1980_s28, %s1602_s13 }
  0xb5   : > { %1462 = vmatprep.subr.bf16.mxu0 %v1461_v46  ;;  %867 = vperm.xlu1 %1565, %v1776_v3   ;;  %p1605_p4 = scmp.lt.s32.totalorder %s1603_s14, %s1597_s12 }
  0xb6   : > { %v400_v48 = vpop.permute.xlu1 %399  ;;  %1464 = vmatpush3.bf16.msra.mxu0 %v1461_v46  ;;  %872 = vperm.xlu0 %1566, %v1783_v5  }
  0xb7   : > { %v418_v49 = vadd.f32 %v400_v48, %v378_v47  ;;  %p1606_p5 = por %p1605_p4, %p1604_p3 }
  0xb8   : > { %v408_v56 = vpop.permute.xlu0 %407 }
  0xb9   : > { %v434_v53 = vmul.f32 0.1, %v418_v49  ;;  %vm426_vm5 = vcmp.gt.f32.partialorder %v418_v49, 0.0  ;;  %v420_v62 = vadd.f32 %v408_v56, %v380_v57  ;;  %1567 = vset.pattern.permute.xlu1 %v1666_v23  ;;  %p1607_p7 = pnand %p1606_p5, %p1600_p2 }
  0xba   : > { %v404_v52 = vpop.permute.xlu1 %403  ;;  %882 = vperm.xlu0 %1566, %v1790_v7   ;;  %894 = vperm.xlu1 %1567, %v1776_v3  }
  0xbb   : > { %v419_v54 = vadd.f32 %v404_v52, %v379_v51  ;;  %v442_v59 = vsel %vm426_vm5, %v418_v49, %v434_v53  ;;  %v436_v1 = vmul.f32 0.1, %v420_v62  ;;  %vm428_vm7 = vcmp.gt.f32.partialorder %v420_v62, 0.0 }
  0xbd   : > { %vm427_vm6 = vcmp.gt.f32.partialorder %v419_v54, 0.0  ;;  %v435_v55 = vmul.f32 0.1, %v419_v54  ;;  %v444_v8 = vsel %vm428_vm7, %v420_v62, %v436_v1  ;;  %v476_v29 = vpop.permute.xlu0 %475 }
  0xbe   : > { %1570 = vset.pattern.permute.xlu0 %v1667_v24  ;;  %898 = vperm.xlu1 %1567, %v1783_v5  }
  0xbf   : > { %v366_v58 = vpop.permute.xlu1 %365  ;;  %v443_v60 = vsel %vm427_vm6, %v419_v54, %v435_v55  ;;  %922 = vperm.xlu0 %1570, %v1776_v3  }
  0xc0   : > { %v1465_v61 = vpack.c.bf16 %v443_v60, %v442_v59  ;;  %v381_v63 = vmul.f32 %v1833_v20, %v366_v58 }
  0xc1   : > { %v461_v31 = vpop.permute.xlu0 %460 }
  0xc2   : > { %1466 = vmatprep.subr.bf16.mxu0 %v1465_v61  ;;  %1568 = vset.pattern.permute.xlu1 %v1667_v24 }
  0xc3   : > { %1468 = vmatpush3.bf16.msra.mxu0 %v1465_v61  ;;  %930 = vperm.xlu0 %1570, %v1771_v2  }
  0xc4   : > { %v412_v0 = vpop.permute.xlu1 %411  ;;  %926 = vperm.xlu1 %1568, %v1783_v5  }
  0xc5   : > { %v421_v4 = vadd.f32 %v412_v0, %v381_v63 }
  0xc7   : > { %vm429_vm8 = vcmp.gt.f32.partialorder %v421_v4, 0.0  ;;  %v437_v6 = vmul.f32 0.1, %v421_v4  ;;  %1574 = vset.pattern.permute.xlu0 %v1668_v25 }
  0xc8   : > { %1569 = vset.pattern.permute.xlu1 %v1665_v22  ;;  %950 = vperm.xlu0 %1574, %v1783_v5  }
  0xc9   : > { %v445_v9 = vsel %vm429_vm8, %v421_v4, %v437_v6  ;;  %877 = vperm.xlu1 %1569, %v1771_v2   ;;  %v471_v26 = vpop.permute.xlu1 %470 }
  0xca   : > { %v1469_v10 = vpack.c.bf16 %v445_v9, %v444_v8 }
  0xcc   : > { %1470 = vmatprep.subr.bf16.mxu0 %v1469_v10 }
  0xcd   : > { %1472 = vmatpush3.bf16.msra.mxu0 %v1469_v10  ;;  %1571 = vset.pattern.permute.xlu1 %v1666_v23  ;;  %v481_v27 = vpop.permute.xlu1 %480 }
  0xce   : > { %902 = vperm.xlu1 %1571, %v1771_v2  }
  0xd0   : > { %1410 = vmatmul.mubr.msk.f32.vlgmr.msra.gmra.mrb[0].mxu0 %vm488_vm0, %v447_v11  ;;  %v620_v11 = vadd.s32 8, %v1820_v15 }
  0xd1   : > { %1412 = vmatprep.mubr.msk.f32.mxu0 %vm488_vm0, %v448_v12  ;;  %v486_v28 = vpop.permute.xlu1 %485 }
  0xd2   : > { %906 = vperm.xlu1 %1571, %v1790_v7  }
  0xd4   : > { %1413 = vmatmul.mubr.msk.f32.gmra.mrb[2].mxu0 %vm488_vm0, %v449_v13 }
  0xd5   : > { %1415 = vmatprep.mubr.msk.f32.mxu0 %vm488_vm0, %v450_v14  ;;  %v466_v30 = vpop.permute.xlu1 %465 }
  0xd6   : > { %1572 = vset.pattern.permute.xlu1 %v1667_v24 }
  0xd7   : > { %934 = vperm.xlu1 %1572, %v1790_v7  }
  0xd8   : > { %1416 = vmatmul.mubr.msk.f32.gmra.mrb[4].mxu0 %vm488_vm0, %v451_v18  ;;  %v673_v18 = vld [vmem:[%s2035_s4 + $0x8] sm:$0xff] }
  0xdb   : > { %1573 = vset.pattern.permute.xlu1 %v1668_v25  ;;  %v675_v25 = vld [vmem:[%s2035_s4 + $0x18] sm:$0xff] }
  0xdc   : > { %946 = vperm.xlu1 %1573, %v1776_v3  }
  0xe0   : > { %954 = vperm.xlu1 %1573, %v1771_v2  }
  0xe4   : > { %958 = vperm.xlu1 %1573, %v1790_v7  }
 0x1a3   : > { %v1411_v32 = vpop.f32.mrb[0].mxu0 }
 0x1a4   : > { %v579_v34 = vadd.f32 %v1411_v32, %v466_v30  ;;  %v573_v35 = vpop.f32.mrb[1].mxu0 }
 0x1a5   : > { %v574_v37 = vadd.f32 %v573_v35, %v461_v31 }
 0x1a6   : > { %v617_v38 = vadd.f32 %v615_v33, %v579_v34 }
 0x1a7   : > { %v616_v39 = vadd.f32 %v614_v36, %v574_v37  ;;  %v649_v40 = vmax.f32 %v574_v37, %v579_v34  ;;  %v1414_v41 = vpop.f32.mrb[2].mxu0 }
 0x1a8   : > { %v589_v42 = vadd.f32 %v1414_v41, %v476_v29  ;;  %v583_v43 = vpop.f32.mrb[3].mxu0 }
 0x1a9   : > { %v621_v44 = vmax.f32 %v616_v39, %v617_v38  ;;  %v650_v45 = vrot.slane %v649_v40, 4  ;;  %v584_v46 = vadd.f32 %v583_v43, %v471_v26 }
 0x1aa   : > { %v607_v47 = vmul.f32 0.1, %v589_v42  ;;  %vm603_vm10 = vcmp.gt.f32.partialorder %v589_v42, 0.0 }
 0x1ab   : > { %v622_v48 = vrot.slane %v621_v44, 4  ;;  %v651_v49 = vmax.f32 %v649_v40, %v650_v45  ;;  %v606_v50 = vmul.f32 0.1, %v584_v46  ;;  %v1417_v51 = vpop.f32.mrb[4].mxu0  ;;  %vm602_vm11 = vcmp.gt.f32.partialorder %v584_v46, 0.0 }
 0x1ac   : > { %v599_v52 = vadd.f32 %v1417_v51, %v486_v28  ;;  %v593_v53 = vpop.f32.mrb[5].mxu0  ;;  %v611_v54 = vsel %vm603_vm10, %v589_v42, %v607_v47  ;;  %v683_v51 = vpop.permute.xlu0 %682 }
 0x1ad   : > { %v623_v55 = vmax.f32 %v621_v44, %v622_v48  ;;  %v652_v56 = vrot.slane %v651_v49, 2  ;;  %v594_v57 = vadd.f32 %v593_v53, %v481_v27  ;;  %v610_v58 = vsel %vm602_vm11, %v584_v46, %v606_v50  ;;  %v977_v48 = vld [vmem:[%s2035_s4 + $0x20] sm:$0xff]  ;;  %v688_v50 = vpop.permute.xlu1 %687 }
 0x1ae   : > { %vm605_vm12 = vcmp.gt.f32.partialorder %v599_v52, 0.0  ;;  %v609_v59 = vmul.f32 0.1, %v599_v52  ;;  %v1473_v60 = vpack.c.bf16 %v611_v54, %v610_v58 }
 0x1af   : > { %v624_v61 = vrot.slane %v623_v55, 2  ;;  %v653_v62 = vmax.f32 %v651_v49, %v652_v56  ;;  %vm604_vm13 = vcmp.gt.f32.partialorder %v594_v57, 0.0  ;;  %v608_v63 = vmul.f32 0.1, %v594_v57 }
 0x1b0   : > { %1474 = vmatprep.subr.bf16.mxu1 %v1473_v60  ;;  %v613_v0 = vsel %vm605_vm12, %v599_v52, %v609_v59  ;;  %v1670_v49 = vmov 4   ;;  %v698_v56 = vpop.permute.xlu0 %697 }
 0x1b1   : > { %v625_v1 = vmax.f32 %v623_v55, %v624_v61  ;;  %v654_v4 = vrot.slane %v653_v62, 1  ;;  %1476 = vmatpush3.bf16.msra.mxu1 %v1473_v60  ;;  %v612_v6 = vsel %vm604_vm13, %v594_v57, %v608_v63  ;;  %1575 = vset.pattern.permute.xlu0 %v1670_v49  ;;  %v693_v55 = vpop.permute.xlu1 %692 }
 0x1b2   : > { %v1477_v8 = vpack.c.bf16 %v613_v0, %v612_v6  ;;  %1576 = vset.pattern.permute.xlu1 %v1670_v49  ;;  %982 = vperm.xlu0 %1575, %v1776_v3  }
 0x1b3   : > { %v626_v9 = vrot.slane %v625_v1, 1  ;;  %v655_v10 = vmax.f32 %v653_v62, %v654_v4  ;;  %986 = vperm.xlu1 %1576, %v1783_v5  }
 0x1b4   : > { %1478 = vmatprep.subr.bf16.mxu1 %v1477_v8 }
 0x1b5   : > { %v627_v12 = vmax.f32 %v625_v1, %v626_v9  ;;  %v656_v13 = vsub.f32 %v574_v37, %v655_v10  ;;  %v657_v14 = vsub.f32 %v579_v34, %v655_v10  ;;  %1480 = vmatpush3.bf16.msra.mxu1 %v1477_v8  ;;  %v1669_v37 = vmov 0.0   ;;  %v1927_v0 = vpop.permute.xlu1 %867 }
 0x1b6   : > { %994 = vperm.xlu0 %1575, %v1790_v7   ;;  %v846_v10 = vmul.f32 0.23025851, %v1829_v17 }
 0x1b7   : > { %vm628_vm14 = vcmp.eq.f32.partialorder %v616_v39, %v627_v12  ;;  %vm629_vm15 = vcmp.eq.f32.partialorder %v617_v38, %v627_v12  ;;  %v658_v21 = vmul.f32 1.442695, %v656_v13  ;;  %v660_v22 = vmul.f32 1.442695, %v657_v14  ;;  %990 = vperm.xlu1 %1576, %v1771_v2  }
 0x1b8   : > { %v630_v23 = vsel %vm628_vm14, %v1820_v15, 16  ;;  %v631_v24 = vsel %vm629_vm15, %v620_v11, 16  ;;  %1427 = vmatmul.mubr.msk.f32.vlgmr.msra.gmra.mrb[0].mxu1 %vm700_vm9, %v673_v18  ;;  %v847_v14 = vmul.f32 1.442695, %v846_v10 }
 0x1b9   : > { %vm632_vm0 = vcmp.lt.s32.totalorder %v630_v23, %v631_v24  ;;  %1579 = vpow2.f32 %v658_v21  ;;  %1429 = vmatprep.mubr.msk.f32.mxu1 %vm700_vm9, %v674_v19  ;;  %v1930_v12 = vpop.permute.xlu1 %894 }
 0x1ba   : > { %v633_v26 = vsel %vm632_vm0, %v630_v23, %v631_v24  ;;  %1581 = vpow2.f32 %v660_v22 }
 0x1bb   : > { %v634_v27 = vrot.slane %v633_v26, 4 }
 0x1bc   : > { %1430 = vmatmul.mubr.msk.f32.gmra.mrb[2].mxu1 %vm700_vm9, %v675_v25 }
 0x1bd   : > { %vm635_vm1 = vcmp.lt.s32.totalorder %v633_v26, %v634_v27  ;;  %1440 = vmatprep.mubr.msk.f32.mxu1 %vm700_vm9, %v977_v48  ;;  %v899_v21 = vpop.permute.xlu1 %898 }
 0x1be   : > { %v636_v28 = vsel %vm635_vm1, %v633_v26, %v634_v27 }
 0x1bf   : > { %v637_v29 = vrot.slane %v636_v28, 2 }
 0x1c1   : > { %vm638_vm2 = vcmp.lt.s32.totalorder %v636_v28, %v637_v29  ;;  %v1932_v25 = vpop.permute.xlu1 %926 }
 0x1c2   : > { %v639_v30 = vsel %vm638_vm2, %v636_v28, %v637_v29 }
 0x1c3   : > { %v1580_v31 = vpop.eup %1579  ;;  %v640_v32 = vrot.slane %v639_v30, 1 }
 0x1c4   : > { %v1582_v33 = vpop.eup %1581 }
 0x1c5   : > { %v662_v34 = vadd.f32 %v1582_v33, %v1580_v31  ;;  %vm641_vm3 = vcmp.lt.s32.totalorder %v639_v30, %v640_v32  ;;  %v878_v17 = vpop.permute.xlu1 %877 }
 0x1c6   : > { %v642_v35 = vsel %vm641_vm3, %v639_v30, %v640_v32 }
 0x1c7   : > { %v663_v36 = vrot.slane %v662_v34, 4  ;;  %vm643_vm4 = vcmp.eq.s32.totalorder %v1820_v15, %v642_v35  ;;  %vm644_vm5 = vcmp.eq.s32.totalorder %v620_v11, %v642_v35 }
 0x1c8   : > { %v1907_v38 = vsel %vm643_vm4, 1.0, %v1669_v37  ;;  %v1909_v39 = vsel %vm644_vm5, 1.0, %v1669_v37 }
 0x1c9   : > { %v664_v40 = vadd.f32 %v663_v36, %v662_v34  ;;  %840 = vst [vmem:[%s1911_s16] sm:$0xff] %v1907_v38  ;;  %841 = vst [vmem:[%s1911_s16 + $0x8] sm:$0xff] %v1909_v39  ;;  %v903_v29 = vpop.permute.xlu1 %902 }
 0x1cb   : > { %v665_v41 = vrot.slane %v664_v40, 2 }
 0x1cd   : > { %v666_v42 = vadd.f32 %v665_v41, %v664_v40 }
 0x1cf   : > { %v667_v43 = vrot.slane %v666_v42, 1 }
 0x1d1   : > { %v668_v44 = vadd.f32 %v667_v43, %v666_v42  ;;  %v873_v43 = vpop.permute.xlu0 %872 }
 0x1d3   : > { %1583 = vrcp.f32 %v668_v44  ;;  %v907_v44 = vpop.permute.xlu1 %906 }
 0x1d4   : > { %1585 = vpow2.f32 %v847_v14 }
 0x1dd   : > { %v1584_v45 = vpop.eup %1583 }
 0x1de   : > { %v671_v46 = vmul.f32 %v1584_v45, %v1582_v33  ;;  %v670_v47 = vmul.f32 %v1584_v45, %v1580_v31  ;;  %v1586_v27 = vpop.eup %1585 }
 0x1df   : > { %v849_v28 = vmul.f32 4.0, %v1586_v27 }
 0x1e0   : > { %817 = vst [vmem:[%s1911_s16 + $0x28] sm:$0xff] %v671_v46  ;;  %816 = vst [vmem:[%s1911_s16 + $0x20] sm:$0xff] %v670_v47  ;;  %v805_v2 = vadd.f32 1e-20, %v671_v46  ;;  %v804_v8 = vadd.f32 1e-20, %v670_v47 }
 0x28b   : > { %v1428_v52 = vpop.f32.mrb[0].mxu1 }
 0x28c   : > { %v779_v53 = vpop.f32.mrb[1].mxu1  ;;  %v785_v54 = vadd.f32 %v1428_v52, %v688_v50  ;;  %v935_v52 = vpop.permute.xlu1 %934 }
 0x28d   : > { %v780_v57 = vadd.f32 %v779_v53, %v683_v51  ;;  %v883_v51 = vpop.permute.xlu0 %882  ;;  %v851_v53 = vld [vmem:[%s318_s9] sm:$0x3] }
 0x28e   : > { %v799_v62 = vmul.f32 %v785_v54, %v785_v54 }
 0x28f   : > { %v1431_v58 = vpop.f32.mrb[2].mxu1  ;;  %v798_v1 = vmul.f32 %v780_v57, %v780_v57 }
 0x290   : > { %v795_v59 = vadd.f32 %v1431_v58, %v698_v56  ;;  %v789_v60 = vpop.f32.mrb[3].mxu1 }
 0x291   : > { %v790_v61 = vadd.f32 %v789_v60, %v693_v55  ;;  %v911_v60 = vsub.s32 1, %v1820_v15 }
 0x292   : > { %v801_v63 = vmul.f32 %v795_v59, %v795_v59 }
 0x293   : > { %v800_v7 = vmul.f32 %v790_v61, %v790_v61 }
 0x294   : > { %v803_v4 = vadd.f32 %v801_v63, %v799_v62  ;;  %v923_v62 = vpop.permute.xlu0 %922  ;;  %v947_v63 = vpop.permute.xlu1 %946 }
 0x295   : > { %v802_v6 = vadd.f32 %v800_v7, %v798_v1 }
 0x296   : > { %v807_v9 = vmul.f32 %v805_v2, %v803_v4 }
 0x297   : > { %v806_v11 = vmul.f32 %v804_v8, %v802_v6 }
 0x299   : > { %v808_v13 = vadd.f32 %v807_v9, %v806_v11  ;;  %v931_v11 = vpop.permute.xlu0 %930 }
 0x29b   : > { %v809_v18 = vrot.slane %v808_v13, 4 }
 0x29d   : > { %v810_v19 = vadd.f32 %v809_v18, %v808_v13  ;;  %v955_v13 = vpop.permute.xlu1 %954 }
 0x29f   : > { %v811_v22 = vrot.slane %v810_v19, 2 }
 0x2a1   : > { %v812_v23 = vadd.f32 %v811_v22, %v810_v19 }
 0x2a3   : > { %v813_v24 = vrot.slane %v812_v23, 1 }
 0x2a5   : > { %v814_v26 = vadd.f32 %v813_v24, %v812_v23  ;;  %v938_v23 = vmul.f32 %v1932_v25, %v1833_v20  ;;  %v940_v24 = vmul.f32 %v935_v52, %v1833_v20 }
 0x2a7   : > { %1587 = vrsqrt.f32 %v814_v26 }
 0x2a8   : > { %1589 = vrsqrt.f32 %v849_v28 }
 0x2b1   : > { %v1588_v30 = vpop.eup %1587 }
 0x2b2   : > { %v818_v31 = vmul.f32 %v1588_v30, %v780_v57  ;;  %v819_v32 = vmul.f32 %v1588_v30, %v785_v54  ;;  %v820_v33 = vmul.f32 %v1588_v30, %v790_v61  ;;  %v821_v34 = vmul.f32 %v1588_v30, %v795_v59  ;;  %v1590_v47 = vpop.eup %1589 }
 0x2b3   : > { %v856_v50 = vrot.slane %v1590_v47, %v1827_v16  ;;  %v979_v47 = vld [vmem:[%s2035_s4 + $0x30] sm:$0xff] }
 0x2b4   : > { %v822_v35 = vmul.f32 %v1907_v38, %v818_v31  ;;  %v823_v36 = vmul.f32 %v1909_v39, %v819_v32  ;;  %v831_v37 = vmul.f32 %v1907_v38, %v820_v33  ;;  %v832_v40 = vmul.f32 %v1909_v39, %v821_v34  ;;  %842 = vst [vmem:[%s1911_s16 + $0x30] sm:$0xff] %v818_v31 }
 0x2b5   : > { %843 = vst [vmem:[%s1911_s16 + $0x38] sm:$0xff] %v819_v32  ;;  %844 = vst [vmem:[%s1911_s16 + $0x40] sm:$0xff] %v820_v33  ;;  %v858_v58 = vmul.f32 %v856_v50, %v851_v53  ;;  %v959_v32 = vpop.permute.xlu1 %958 }
 0x2b6   : > { %845 = vst [vmem:[%s1911_s16 + $0x48] sm:$0xff] %v821_v34  ;;  %v824_v41 = vadd.f32 %v823_v36, %v822_v35  ;;  %v833_v42 = vadd.f32 %v832_v40, %v831_v37 }
 0x2b8   : > { %v825_v45 = vrot.slane %v824_v41, 4  ;;  %v834_v46 = vrot.slane %v833_v42, 4 }
 0x2b9   : > { %v987_v50 = vpop.permute.xlu1 %986 }
 0x2ba   : > { %v826_v48 = vadd.f32 %v825_v45, %v824_v41  ;;  %v835_v49 = vadd.f32 %v834_v46, %v833_v42  ;;  %v978_v46 = vld [vmem:[%s2035_s4 + $0x28] sm:$0xff] }
 0x2bc   : > { %v827_v38 = vrot.slane %v826_v48, 2  ;;  %v836_v39 = vrot.slane %v835_v49, 2 }
 0x2be   : > { %v837_v54 = vadd.f32 %v836_v39, %v835_v49  ;;  %v828_v55 = vadd.f32 %v827_v38, %v826_v48  ;;  %v980_v48 = vld [vmem:[%s2035_s4 + $0x38] sm:$0xff]  ;;  %v1106_v49 = vld [vmem:[%s2035_s4 + $0x40] sm:$0xff]  ;;  %v1671_v38 = vmov 5  }
 0x2bf   : > { %1578 = vset.pattern.permute.xlu0 %v1671_v38  ;;  %1577 = vset.pattern.permute.xlu1 %v1671_v38 }
 0x2c0   : > { %v838_v56 = vrot.slane %v837_v54, 1  ;;  %v829_v57 = vrot.slane %v828_v55, 1  ;;  %1117 = vperm.xlu0 %1578, %v1783_v5   ;;  %1112 = vperm.xlu1 %1577, %v1776_v3  }
 0x2c2   : > { %v830_v59 = vadd.f32 %v829_v57, %v828_v55  ;;  %v839_v61 = vadd.f32 %v838_v56, %v837_v54 }
 0x2c4   : > { %v859_v1 = vadd.f32 %v858_v58, %v830_v59  ;;  %v860_v7 = vadd.f32 %v858_v58, %v839_v61  ;;  %v991_v59 = vpop.permute.xlu1 %990 }
 0x2c6   : > { %v888_v4 = vrot.slane %v859_v1, %v1827_v16  ;;  %v912_v2 = vrot.slane %v860_v7, %v911_v60  ;;  %v937_v16 = vmul.f32 %v923_v62, %v1833_v20 }
 0x2c8   : > { %v889_v6 = vmul.f32 %v888_v4, %v1927_v0  ;;  %v913_v8 = vmul.f32 %v912_v2, %v1930_v12  ;;  %v914_v9 = vmul.f32 %v912_v2, %v899_v21  ;;  %v891_v10 = vmul.f32 %v888_v4, %v878_v17  ;;  %v951_v17 = vpop.permute.xlu0 %950 }
 0x2c9   : > { %v915_v14 = vmul.f32 %v912_v2, %v903_v29  ;;  %v890_v18 = vmul.f32 %v888_v4, %v873_v43  ;;  %v916_v19 = vmul.f32 %v912_v2, %v907_v44  ;;  %v892_v15 = vmul.f32 %v888_v4, %v883_v51 }
 0x2ca   : > { %v917_v22 = vadd.f32 %v913_v8, %v889_v6  ;;  %v939_v12 = vmul.f32 %v931_v11, %v1833_v20  ;;  %v1107_v8 = vld [vmem:[%s2035_s4 + $0x48] sm:$0xff] }
 0x2cb   : > { %v919_v26 = vadd.f32 %v915_v14, %v891_v10  ;;  %v918_v0 = vadd.f32 %v914_v9, %v890_v18  ;;  %v920_v27 = vadd.f32 %v916_v19, %v892_v15 }
 0x2cc   : > { %v941_v21 = vadd.f32 %v937_v16, %v917_v22  ;;  %v983_v39 = vpop.permute.xlu0 %982 }
 0x2cd   : > { %v943_v28 = vadd.f32 %v939_v12, %v919_v26  ;;  %v944_v29 = vadd.f32 %v940_v24, %v920_v27  ;;  %v942_v30 = vadd.f32 %v938_v23, %v918_v0 }
 0x2ce   : > { %v961_v31 = vadd.f32 %v947_v63, %v941_v21 }
 0x2cf   : > { %v963_v33 = vadd.f32 %v955_v13, %v943_v28  ;;  %v964_v34 = vadd.f32 %v959_v32, %v944_v29  ;;  %v962_v35 = vadd.f32 %v951_v17, %v942_v30 }
 0x2d0   : > { %vm965_vm6 = vcmp.gt.f32.partialorder %v961_v31, 0.0  ;;  %v969_v25 = vmul.f32 0.1, %v961_v31  ;;  %v995_v56 = vpop.permute.xlu0 %994 }
 0x2d1   : > { %vm967_vm7 = vcmp.gt.f32.partialorder %v963_v33, 0.0  ;;  %v971_v36 = vmul.f32 0.1, %v963_v33  ;;  %vm968_vm8 = vcmp.gt.f32.partialorder %v964_v34, 0.0  ;;  %v972_v37 = vmul.f32 0.1, %v964_v34 }
 0x2d2   : > { %vm966_vm10 = vcmp.gt.f32.partialorder %v962_v35, 0.0  ;;  %v970_v40 = vmul.f32 0.1, %v962_v35  ;;  %v973_v41 = vsel %vm965_vm6, %v961_v31, %v969_v25 }
 0x2d3   : > { %v975_v20 = vsel %vm967_vm7, %v963_v33, %v971_v36  ;;  %v976_v42 = vsel %vm968_vm8, %v964_v34, %v972_v37 }
 0x2d4   : > { %v974_v43 = vsel %vm966_vm10, %v962_v35, %v970_v40  ;;  %v1485_v44 = vpack.c.bf16 %v976_v42, %v975_v20 }
 0x2d5   : > { %v1481_v45 = vpack.c.bf16 %v974_v43, %v973_v41 }
 0x2d7   : > { %1482 = vmatprep.subr.bf16.mxu1 %v1481_v45 }
 0x2d8   : > { %1484 = vmatpush3.bf16.msra.mxu1 %v1481_v45 }
 0x2d9   : > { %1486 = vmatprep.subr.bf16.mxu1 %v1485_v44 }
 0x2dc   : > { %1488 = vmatpush3.bf16.msra.mxu1 %v1485_v44 }
 0x2df   : > { %1441 = vmatmul.mubr.msk.f32.vlgmr.msra.gmra.mrb[4].mxu1 %vm700_vm9, %v978_v46 }
 0x2e0   : > { %1443 = vmatprep.mubr.msk.f32.mxu1 %vm700_vm9, %v979_v47 }
 0x2e3   : > { %1444 = vmatmul.mubr.msk.f32.gmra.mrb[6].mxu1 %vm700_vm9, %v980_v48 }
 0x2e4   : > { %1454 = vmatprep.mubr.msk.f32.mxu1 %vm700_vm9, %v1106_v49 }
 0x33f   : > { %v1118_v9 = vpop.permute.xlu0 %1117  ;;  %v1113_v10 = vpop.permute.xlu1 %1112 }
 0x3b2   : > { %v1442_v51 = vpop.f32.mrb[4].mxu1 }
 0x3b3   : > { %v1081_v52 = vadd.f32 %v1442_v51, %v987_v50  ;;  %v1075_v53 = vpop.f32.mrb[5].mxu1 }
 0x3b4   : > { %v1076_v54 = vadd.f32 %v1075_v53, %v983_v39 }
 0x3b5   : > { %vm1095_vm11 = vcmp.gt.f32.partialorder %v1081_v52, 0.0  ;;  %v1099_v55 = vmul.f32 0.1, %v1081_v52 }
 0x3b6   : > { %vm1094_vm12 = vcmp.gt.f32.partialorder %v1076_v54, 0.0  ;;  %v1098_v57 = vmul.f32 0.1, %v1076_v54  ;;  %v1445_v58 = vpop.f32.mrb[6].mxu1 }
 0x3b7   : > { %v1091_v60 = vadd.f32 %v1445_v58, %v995_v56  ;;  %v1085_v61 = vpop.f32.mrb[7].mxu1  ;;  %v1103_v62 = vsel %vm1095_vm11, %v1081_v52, %v1099_v55 }
 0x3b8   : > { %v1086_v63 = vadd.f32 %v1085_v61, %v991_v59  ;;  %v1102_v5 = vsel %vm1094_vm12, %v1076_v54, %v1098_v57 }
 0x3b9   : > { %vm1097_vm13 = vcmp.gt.f32.partialorder %v1091_v60, 0.0  ;;  %v1101_v3 = vmul.f32 0.1, %v1091_v60  ;;  %v1489_v1 = vpack.c.bf16 %v1103_v62, %v1102_v5 }
 0x3ba   : > { %vm1096_vm14 = vcmp.gt.f32.partialorder %v1086_v63, 0.0  ;;  %v1100_v7 = vmul.f32 0.1, %v1086_v63 }
 0x3bb   : > { %1490 = vmatprep.subr.bf16.mxu1 %v1489_v1  ;;  %v1105_v4 = vsel %vm1097_vm13, %v1091_v60, %v1101_v3 }
 0x3bc   : > { %1492 = vmatpush3.bf16.msra.mxu1 %v1489_v1  ;;  %v1104_v2 = vsel %vm1096_vm14, %v1086_v63, %v1100_v7 }
 0x3bd   : > { %v1493_v6 = vpack.c.bf16 %v1105_v4, %v1104_v2 }
 0x3bf   : > { %1494 = vmatprep.subr.bf16.mxu1 %v1493_v6 }
 0x3c0   : > { %1496 = vmatpush3.bf16.msra.mxu1 %v1493_v6 }
 0x3c3   : > { %1455 = vmatmul.mubr.msk.f32.vlgmr.msra.gmra.mrb[8].mxu1 %vm700_vm9, %v1107_v8 }
 0x496   : > { %v1456_v11 = vpop.f32.mrb[8].mxu1 }
 0x497   : > { %v1198_v13 = vadd.f32 %v1456_v11, %v1118_v9  ;;  %v1192_v14 = vpop.f32.mrb[9].mxu1 }
 0x498   : > { %v1193_v18 = vadd.f32 %v1192_v14, %v1113_v10 }
 0x49a   : > { %v1201_v19 = vmax.f32 %v1193_v18, %v1198_v13 }
 0x49c   : > { %v1202_v15 = vrot.slane %v1201_v19, 4 }
 0x49e   : > { %v1203_v22 = vmax.f32 %v1201_v19, %v1202_v15 }
 0x4a0   : > { %v1204_v23 = vrot.slane %v1203_v22, 2 }
 0x4a2   : > { %v1205_v24 = vmax.f32 %v1203_v22, %v1204_v23 }
 0x4a4   : > { %v1206_v16 = vrot.slane %v1205_v24, 1 }
 0x4a6   : > { %v1207_v26 = vmax.f32 %v1205_v24, %v1206_v16 }
 0x4a8   : > { %v1208_v0 = vsub.f32 %v1193_v18, %v1207_v26  ;;  %v1209_v27 = vsub.f32 %v1198_v13, %v1207_v26 }
 0x4aa   : > { %v1210_v12 = vmul.f32 1.442695, %v1208_v0  ;;  %v1212_v21 = vmul.f32 1.442695, %v1209_v27 }
 0x4ac   : > { %1591 = vpow2.f32 %v1210_v12 }
 0x4ad   : > { %1593 = vpow2.f32 %v1212_v21 }
 0x4b6   : > { %v1592_v17 = vpop.eup %1591 }
 0x4b7   : > { %v1594_v28 = vpop.eup %1593 }
 0x4b8   : > { %v1214_v29 = vadd.f32 %v1594_v28, %v1592_v17 }
 0x4ba   : > { %v1215_v30 = vrot.slane %v1214_v29, 4 }
 0x4bc   : > { %v1216_v31 = vadd.f32 %v1215_v30, %v1214_v29 }
 0x4be   : > { %v1217_v32 = vrot.slane %v1216_v31, 2 }
 0x4c0   : > { %v1218_v33 = vadd.f32 %v1217_v32, %v1216_v31 }
 0x4c2   : > { %v1219_v34 = vrot.slane %v1218_v33, 1 }
 0x4c4   : > { %v1220_v35 = vadd.f32 %v1219_v34, %v1218_v33 }
 0x4c6   : > { %1595 = vrcp.f32 %v1220_v35 }
 0x4d0   : > { %v1596_v25 = vpop.eup %1595 }
 0x4d1   : > { %v1222_v36 = vmul.f32 %v1596_v25, %v1592_v17  ;;  %v1223_v37 = vmul.f32 %v1596_v25, %v1594_v28 }
 0x4d3   : > { %1224 = vst [vmem:[%s1911_s16 + $0x10] sm:$0xff] %v1222_v36  ;;  %1225 = vst [vmem:[%s1911_s16 + $0x18] sm:$0xff] %v1223_v37 }
 0x4d4   : > { %1610 = shalt.err (!%p1607_p7)
}
 0x4d5   : > { %s1611_s16 = scalar_lea.hbm %s1985_s10, 1280  ;;  %s1615_s18 = scalar_lea.hbm %s2037_s6, 2560 }
 0x4d6   : > { %p1612_p10 = scmp.ne.s32.totalorder %s1985_s10, %s1611_s16  ;;  %p1616_p13 = scmp.lt.u32.totalorder %s1985_s10, %s2037_s6 }
 0x4d7   : > { %p1617_p0 = scmp.lt.u32.totalorder %s1615_s18, %s1611_s16  ;;  %p1619_p2 = scmp.lt.u32.totalorder %s1611_s16, %s1985_s10 }
 0x4d8   : > { %p1613_p11 = pnand %p1612_p10, %p1750_p6 }
 0x4d9   : > { %p1618_p1 = por %p1617_p0, %p1616_p13 }
 0x4da   : > { %p1614_p12 = pneg %p1613_p11 }
 0x4db   : > { %p1620_p3 = por %p1619_p2, %p1618_p1 }
 0x4dd   : > { %p1621_p4 = pnand %p1620_p3, %p1614_p12 }
 0x4df   : > { %1624 = shalt.err (!%p1621_p4)
}
 0x4e0   : > { %s1673_s9 = smov 128   ;;  %s1674_s19 = smov 256  }
 0x4e1   : > { %s1675_s12 = smov 8  }
 0x4e2   : > { %1498 = dma.vmem_to_hbm [thread:$0]  (%p1750_p6), %s1980_s28, 1280, %s1985_s10, %s1227_s11, %s1673_s9, %s1674_s19, %s1675_s12  }
 0x4e3 PF: > { %s1254_s25 = sand.u32 1, %s1647_s21   ;;  %p1501_p5 = pnand %p1330_p9, %p1754_p8 }
 0x4e4   : > { %s1255_s13 = scalar_lea.sflag [#allocation4], %s1254_s25 }
 0x4e5   : > { %1642 = dma.done.wait (!%p1501_p5), %s1255_s13, 1280  }
 0x4e6   : > { %1644 = vsyncadd (!%p1501_p5), %s1255_s13, 4294966016  ;;  %p16_p7 = scmp.ge.s32.totalorder %s1736_s27, 4   ;;  %s2040_s21 = smov %s1651_s22 }
 0x4e7   : > { %s2041_s22 = smov %s1655_s23  ;;  %s2042_s23 = smov %s1748_s30 }
 0x4e8   : > { %s2043_s24 = smov %s1736_s27  ;;  %18 = sbr.rel (!%p16_p7) target bundleno = 3 (0x3), region = 128 }
 0x4ef   :  { %1260 = vsyncpa [#allocation4], 1 }
 0x4f0   :  { %1262 = vsyncpa [#allocation4 + $0x1], 1 }

</bundles_post_ra>
